<compile_context>
chip_gen: v5e
topology: v5e:2x2
jax: 0.10.0
libtpu: 0.0.40
codegen_flags: <defaults>
</compile_context>

<pallas_src>
import jax
import jax.numpy as jnp
from jax.experimental import pallas as pl
from jax.experimental.pallas import tpu as pltpu


def _round_up(x, m):
    return ((x + m - 1) // m) * m


def _vmem_capacity_bytes():
    """Physical per-core VMEM (128 MiB on v5e/v6e, 64 MiB on v7x)."""
    try:
        cap = getattr(pltpu.get_tpu_info(), "vmem_capacity_bytes", None)
        if cap:
            return int(cap)
    except Exception:
        pass
    return 128 * 1024 * 1024


# ---------------------------------------------------------------------------
# Text branch: txt_feat = txt_pooled @ w_txt ; L2-normalize ; store TRANSPOSED
# ([D_pad, N_pad]) so the image kernel's similarity matmul needs no XLU
# transpose.  Tiny one-time call; bf16 MXU operands, f32 accumulate, rsqrt.
# ---------------------------------------------------------------------------
def clip_text_kernel(txt_ref, wtxt_ref, txtn_t_ref):
    feat = jnp.dot(txt_ref[...], wtxt_ref[...],
                   preferred_element_type=jnp.float32)          # [N_pad, D_pad]
    ss = jnp.sum(feat * feat, axis=-1, keepdims=True)
    # Guarded rsqrt: padded all-zero class rows stay exactly zero (not NaN).
    inv = jnp.where(ss > 0.0, jax.lax.rsqrt(ss), 0.0)
    # One-time transpose here removes a per-batch-tile transpose downstream.
    txtn_t_ref[...] = jnp.transpose(feat * inv).astype(txtn_t_ref.dtype)


def clip_text_features_t(txt_pooled, w_txt, n_pad, d_pad):
    """Normalized text features, stored transposed: [d_pad, n_pad] bf16."""
    N, E = txt_pooled.shape
    D = w_txt.shape[1]
    txt_p = jnp.zeros((n_pad, E), jnp.bfloat16).at[:N].set(
        txt_pooled.astype(jnp.bfloat16))
    wtxt_p = jnp.zeros((E, d_pad), jnp.bfloat16).at[:, :D].set(
        w_txt.astype(jnp.bfloat16))
    return pl.pallas_call(
        clip_text_kernel,
        out_shape=jax.ShapeDtypeStruct((d_pad, n_pad), jnp.bfloat16),
        in_specs=[pl.BlockSpec(memory_space=pltpu.MemorySpace.VMEM),
                  pl.BlockSpec(memory_space=pltpu.MemorySpace.VMEM)],
        out_specs=pl.BlockSpec(memory_space=pltpu.MemorySpace.VMEM),
        cost_estimate=pl.CostEstimate(
            flops=2 * n_pad * E * d_pad,
            transcendentals=n_pad,
            bytes_accessed=(n_pad * E + E * d_pad + n_pad * d_pad) * 2),
    )(txt_p, wtxt_p)


def prepare_clip_text_and_weights(w_img, w_txt, txt_pooled):
    """One-time prep, hoisted out of the per-batch path: pad+cast the image
    projection to bf16 and compute the normalized, transposed text block."""
    F1, D = w_img.shape
    N = txt_pooled.shape[0]
    D_pad = _round_up(D, 128)
    N_pad = _round_up(N, 128)
    F1_pad = _round_up(F1, 256)        # pad K to 256 only, never to tk
    if (F1_pad, D_pad) == (F1, D):
        w_img_p = w_img.astype(jnp.bfloat16)
    else:
        w_img_p = jnp.zeros((F1_pad, D_pad), jnp.bfloat16).at[:F1, :D].set(
            w_img.astype(jnp.bfloat16))
    txtn_t = clip_text_features_t(txt_pooled, w_txt, N_pad, D_pad)
    return w_img_p, txtn_t


# ---------------------------------------------------------------------------
# Image branch + similarity.  Grid = (B_pad/tb, F1_pad/tk): the image
# projection is a K-reduction into an f32 VMEM accumulator; on the last K
# step the tile is normalized (rsqrt) and multiplied on the MXU against the
# resident transposed text block, scaled by exp(logit_scale).
# ---------------------------------------------------------------------------
def clip_image_logits_kernel(scale_ref, img_ref, wimg_ref, txtn_t_ref,
                             logits_ref, acc_ref):
    k = pl.program_id(1)

    @pl.when(k == 0)
    def _init():
        acc_ref[...] = jnp.zeros_like(acc_ref)

    # bf16 tiles -> f32 accumulator on the MXU.
    acc_ref[...] += jnp.dot(img_ref[...], wimg_ref[...],
                            preferred_element_type=jnp.float32)

    @pl.when(k == pl.num_programs(1) - 1)
    def _finalize():
        feat = acc_ref[...]
        ss = jnp.sum(feat * feat, axis=-1, keepdims=True)
        # rsqrt (EUP) instead of divide; padded zero rows stay exactly zero.
        inv = jnp.where(ss > 0.0, jax.lax.rsqrt(ss), 0.0)
        img_norm = (feat * inv).astype(jnp.bfloat16)
        # txtn_t is [D_pad, N_pad]: plain MXU matmul, no in-kernel transpose.
        logits_ref[...] = jnp.dot(
            img_norm, txtn_t_ref[...],
            preferred_element_type=jnp.float32) * scale_ref[0, 0]


def _pick_tiles(B_pad, F1_pad, tb, tk):
    if tb is None:
        # HBM-bound on w_img: large tb slashes re-streaming.  Use the full
        # (sublane-padded) batch as a single tile up to 512 rows; beyond that
        # use 512 (256-aligned for the v6e/v7x MXU, >=2 tiles so the
        # "parallel" batch axis still feeds both v7x TensorCores).
        tb = B_pad if B_pad <= 512 else 512
    B_pad = _round_up(B_pad, tb)
    if tk is not None and F1_pad % tk != 0:
        tk = None                      # never pad K up to tk; fall back
    if tk is None:
        for cand in (2048, 1024, 512, 256):
            if F1_pad % cand == 0:
                tk = cand
                break
    return B_pad, F1_pad, tb, tk


def clip_image_logits(imgs, w_img_p, txtn_t, logit_scale, *, tb=None, tk=None):
    """imgs: [B, C, H, W] NCHW (f32).  w_img_p: [F1_pad, D_pad] bf16
    (pre-padded via prepare_clip_text_and_weights).  txtn_t: [D_pad, N_pad]
    bf16 normalized, transposed text features.  Returns [B_pad, N_pad] f32."""
    B = imgs.shape[0]
    F1 = imgs.shape[1] * imgs.shape[2] * imgs.shape[3]
    F1_pad, D_pad = w_img_p.shape
    N_pad = txtn_t.shape[1]

    # Pad the batch only to the bf16 sublane granularity, not to a tile size.
    B_pad = _round_up(B, 16)
    B_pad, F1_pad, tb, tk = _pick_tiles(B_pad, F1_pad, tb, tk)

    imgs_flat = imgs.reshape(B, F1).astype(jnp.bfloat16)
    if B_pad == B and F1_pad == F1:
        imgs_p = imgs_flat
    else:
        imgs_p = jnp.zeros((B_pad, F1_pad), jnp.bfloat16).at[:B, :F1].set(
            imgs_flat)

    # exp(logit_scale) as a (1,1) SMEM scalar.
    scale = jnp.reshape(jnp.exp(logit_scale.astype(jnp.float32)), (1, 1))

    grid = (B_pad // tb, F1_pad // tk)
    n_btiles = grid[0]

    # VMEM footprint: double-buffered bf16 img / w_img tiles, single-buffered
    # resident text block, double-buffered f32 logits tile, f32 accumulator.
    vmem_bytes = (2 * tb * tk * 2
                  + 2 * tk * D_pad * 2
                  + 1 * N_pad * D_pad * 2
                  + 2 * tb * N_pad * 4
                  + tb * D_pad * 4)
    # Generation-aware cap with ~15% headroom for Mosaic internal scratch
    # (~54 MiB on v7x, ~108 MiB on v5e/v6e).
    vmem_cap = int(_vmem_capacity_bytes() * 0.85)
    vmem_limit = int(min(vmem_cap, max(2 * vmem_bytes, 32 * 1024 * 1024)))

    # NOTE(v5e): if the DMA is still exposed there, sweep
    # pipeline_mode=pl.Buffered(3) on the imgs / w_img specs.
    logits_pad = pl.pallas_call(
        clip_image_logits_kernel,
        out_shape=jax.ShapeDtypeStruct((B_pad, N_pad), jnp.float32),
        grid_spec=pltpu.PrefetchScalarGridSpec(
            num_scalar_prefetch=0,
            grid=grid,
            in_specs=[
                pl.BlockSpec(memory_space=pltpu.MemorySpace.SMEM),  # exp(scale)
                pl.BlockSpec((tb, tk), lambda i, k: (i, k)),        # imgs tile
                pl.BlockSpec((tk, D_pad), lambda i, k: (k, 0)),     # w_img tile
                pl.BlockSpec((D_pad, N_pad), lambda i, k: (0, 0),   # resident txt
                             pipeline_mode=pl.Buffered(1)),
            ],
            out_specs=pl.BlockSpec((tb, N_pad), lambda i, k: (i, 0)),
            scratch_shapes=[pltpu.VMEM((tb, D_pad), jnp.float32)],
        ),
        compiler_params=pltpu.CompilerParams(
            dimension_semantics=("parallel", "arbitrary"),
            vmem_limit_bytes=vmem_limit),
        cost_estimate=pl.CostEstimate(
            flops=2 * B_pad * F1_pad * D_pad + 2 * B_pad * N_pad * D_pad,
            transcendentals=B_pad,
            bytes_accessed=(B_pad * F1_pad * 2
                            + n_btiles * F1_pad * D_pad * 2  # w_img re-stream
                            + N_pad * D_pad * 2
                            + B_pad * N_pad * 4)),
    )(scale, imgs_p, w_img_p, txtn_t)
    return logits_pad


def clip_classifier(imgs, txt_pooled, w_img, w_txt, logit_scale,
                    *, tb=None, tk=None):
    """Convenience end-to-end wrapper.  Returns logits [B, N] (f32)."""
    B = imgs.shape[0]
    N = txt_pooled.shape[0]
    w_img_p, txtn_t = prepare_clip_text_and_weights(w_img, w_txt, txt_pooled)
    logits_pad = clip_image_logits(imgs, w_img_p, txtn_t, logit_scale,
                                   tb=tb, tk=tk)
    return logits_pad[:B, :N]


if __name__ == "__main__":
    key = jax.random.PRNGKey(0)
    k_img, k_lab, k_emb, k_wi, k_wt = jax.random.split(key, 5)

    # Small, module-consistent shapes.
    B, C, H, W = 2, 4, 16, 16        # batch of images, NCHW
    N, L = 8, 8                      # num_classes (text prompts), context len
    V, E = 32, 64                    # vocab size, token embedding dim
    D = 32                           # shared CLIP feature dim

    imgs = jax.random.normal(k_img, (B, C, H, W), jnp.float32)
    labels = jax.random.randint(k_lab, (N, L), 0, V)          # tokenized prompts

    # Deterministic synthetic parameters.
    tok_emb = jax.random.normal(k_emb, (V, E), jnp.float32) * 0.02
    w_img = jax.random.normal(k_wi, (C * H * W, D), jnp.float32) * 0.02
    w_txt = jax.random.normal(k_wt, (E, D), jnp.float32) * 0.02
    logit_scale = jnp.array(jnp.log(1.0 / 0.07), jnp.float32)  # CLIP init

    # Glue for the synthetic text encoder: embedding lookup + mean pool.
    txt_pooled = jnp.mean(tok_emb[labels], axis=1)             # [N, E]

    # One-time prep (hoisted out of the per-batch path).
    w_img_p, txtn_t = prepare_clip_text_and_weights(w_img, w_txt, txt_pooled)

    # Per-batch call.  tk=256 forces 4 K-reduction steps so the accumulator
    # grid path is exercised even at toy sizes (auto-pick would use tk=1024).
    logits_pad = clip_image_logits(imgs, w_img_p, txtn_t, logit_scale, tk=256)
    logits = logits_pad[:B, :N]
    jax.block_until_ready(logits)
    assert logits.shape == (B, N) and logits.dtype == jnp.float32

    # f32 reference check (bf16-appropriate tolerance).
    img_feat = imgs.reshape(B, -1) @ w_img
    txt_feat = txt_pooled @ w_txt
    ref = (img_feat / jnp.linalg.norm(img_feat, axis=-1, keepdims=True)) @ (
        txt_feat / jnp.linalg.norm(txt_feat, axis=-1, keepdims=True)).T
    ref = ref * jnp.exp(logit_scale)
    assert jnp.allclose(logits, ref, atol=0.5, rtol=0.1), (
        float(jnp.max(jnp.abs(logits - ref))))

    print("KERNEL_OK")
</pallas_src>

<mosaic_0001>
module attributes {stable_mosaic.version = 11 : i64} {
  func.func @clip_text_kernel(%arg0: memref<128x64xbf16, #tpu.memory_space<vmem>>, %arg1: memref<64x128xbf16, #tpu.memory_space<vmem>>, %arg2: memref<128x128xbf16, #tpu.memory_space<vmem>>) attributes {dimension_semantics = [], scalar_prefetch = 0 : i64, scratch_operands = 0 : i64, tpu.core_type = #tpu.core_type<tc>} {
    %c0 = arith.constant 0 : index
    %c0_0 = arith.constant 0 : index
    %0 = vector.load %arg0[%c0, %c0_0] : memref<128x64xbf16, #tpu.memory_space<vmem>>, vector<128x64xbf16>
    %c0_1 = arith.constant 0 : index
    %c0_2 = arith.constant 0 : index
    %1 = vector.load %arg1[%c0_1, %c0_2] : memref<64x128xbf16, #tpu.memory_space<vmem>>, vector<64x128xbf16>
    %cst = arith.constant dense<0.000000e+00> : vector<128x128xf32>
    %2 = tpu.matmul %0, %1, %cst {dimension_numbers = #tpu.dot_dimension_numbers<[1], [0], [0], [1], [0, 0, 1, 1], [], []>} : vector<128x64xbf16>, vector<64x128xbf16>, vector<128x128xf32> -> vector<128x128xf32>
    %3 = arith.mulf %2, %2 : vector<128x128xf32>
    %cst_3 = arith.constant dense<0.000000e+00> : vector<128xf32>
    %4 = vector.multi_reduction <add>, %3, %cst_3 [1] : vector<128x128xf32> to vector<128xf32>
    %5 = vector.shape_cast %4 : vector<128xf32> to vector<128x1xf32>
    %cst_4 = arith.constant 0.000000e+00 : f32
    %6 = vector.broadcast %cst_4 : f32 to vector<128x1xf32>
    %7 = arith.cmpf ogt, %5, %6 : vector<128x1xf32>
    %8 = math.rsqrt %5 : vector<128x1xf32>
    %cst_5 = arith.constant 0.000000e+00 : f32
    %9 = vector.broadcast %cst_5 : f32 to vector<128x1xf32>
    %10 = arith.select %7, %8, %9 : vector<128x1xi1>, vector<128x1xf32>
    %11 = vector.broadcast %10 : vector<128x1xf32> to vector<128x128xf32>
    %12 = arith.mulf %2, %11 : vector<128x128xf32>
    %13 = tpu.transpose %12, [1, 0] : vector<128x128xf32> -> vector<128x128xf32>
    %14 = arith.truncf %13 : vector<128x128xf32> to vector<128x128xbf16>
    %c0_6 = arith.constant 0 : index
    %c0_7 = arith.constant 0 : index
    %15 = vector.load %arg2[%c0_6, %c0_7] : memref<128x128xbf16, #tpu.memory_space<vmem>>, vector<128x128xbf16>
    tpu.vector_store %arg2[%c0_6, %c0_7], %14 {strides = array<i32>} : memref<128x128xbf16, #tpu.memory_space<vmem>>, vector<128x128xbf16>,
    return
  }
}

</mosaic_0001>

<bundles_post_ra>
// kernel: tpu_custom_call.1
= control target key start
LH: loop header
LB: loop body
LE: loop exit
PB: predicated region body
PF: predicated region fallthrough
CT: control target
= control target key end

     0   :  { %s912_s0 = inlined_call_operand.vmem [shape: bf16[128,64], index: 0, kind: input, shape index: {}]   ;;  %s913_s1 = inlined_call_operand.vmem [shape: bf16[64,128], index: 1, kind: input, shape index: {}]   ;;  %s914_s2 = inlined_call_operand.hbm [shape: bf16[128,128], index: 2, kind: output, shape index: {}]  }
   0x1   :  { %v580_v0 = vld [vmem:[%s913_s1 + $0x18] sm:$0xff]  ;;  %v579_v1 = vld [vmem:[%s913_s1 + $0x10] sm:$0xff] }
   0x2   :  { %130 = vmatpush.bf16.msra.mxu0 %v580_v0  ;;  %628 = vmatpush.bf16.msra.mxu1 %v580_v0 }
   0x3   :  { %629 = vmatpush.bf16.msra.mxu2 %v580_v0  ;;  %630 = vmatpush.bf16.msra.mxu3 %v580_v0 }
   0x4   :  { %7 = vsyncpa [#allocation3], 0  ;;  %v578_v2 = vld [vmem:[%s913_s1 + $0x8] sm:$0xff]  ;;  %v577_v3 = vld [vmem:[%s913_s1] sm:$0xff]  ;;  %vm101_vm0 = vcmask 523264   ;;  %s501_s7 = sshll.u32 %s914_s2, 4  ;;  %s502_s7 = int_to_ptr.hbm [resolvable:$true] %s501_s7 }
   0x5   :  { %v569_v4 = vld [vmem:[%s912_s0] sm:$0xff]  ;;  %v571_v5 = vld [vmem:[%s912_s0 + $0x10] sm:$0xff]  ;;  %v570_v8 = vld [vmem:[%s912_s0 + $0x8] sm:$0xff]  ;;  %s702_s8 = smov 64   ;;  %s703_s9 = smov 4  }
   0x6   :  { %131 = vmatpush.bf16.msra.mxu0 %v579_v1  ;;  %631 = vmatpush.bf16.msra.mxu1 %v579_v1  ;;  %v573_v6 = vld [vmem:[%s912_s0 + $0x20] sm:$0xff]  ;;  %v575_v7 = vld [vmem:[%s912_s0 + $0x30] sm:$0xff]  ;;  %v572_v9 = vld [vmem:[%s912_s0 + $0x18] sm:$0xff] }
   0x7   :  { %632 = vmatpush.bf16.msra.mxu2 %v579_v1  ;;  %633 = vmatpush.bf16.msra.mxu3 %v579_v1  ;;  %v574_v10 = vld [vmem:[%s912_s0 + $0x28] sm:$0xff]  ;;  %v576_v11 = vld [vmem:[%s912_s0 + $0x38] sm:$0xff]  ;;  %s701_s0 = smov [#allocation2]  }
   0x8   :  { %s499_s4 = sshll.u32 %s701_s0, 4  ;;  %s500_s4 = int_to_ptr.vmem [resolvable:$true] %s499_s4 }
   0xa   :  { %132 = vmatpush.bf16.msra.mxu0 %v578_v2  ;;  %634 = vmatpush.bf16.msra.mxu1 %v578_v2 }
   0xb   :  { %635 = vmatpush.bf16.msra.mxu2 %v578_v2  ;;  %636 = vmatpush.bf16.msra.mxu3 %v578_v2 }
   0xe   :  { %133 = vmatpush.bf16.msra.mxu0 %v577_v3  ;;  %637 = vmatpush.bf16.msra.mxu1 %v577_v3 }
   0xf   :  { %638 = vmatpush.bf16.msra.mxu2 %v577_v3  ;;  %639 = vmatpush.bf16.msra.mxu3 %v577_v3 }
  0x11   :  { %561 = vmatmul.msk.bf16.vlgmr.msra.gmra.mxu0 %vm101_vm0, %v569_v4  ;;  %563 = vmatmul.msk.bf16.vlgmr.msra.gmra.mxu1 %vm101_vm0, %v571_v5 }
  0x12   :  { %565 = vmatmul.msk.bf16.vlgmr.msra.gmra.mxu2 %vm101_vm0, %v573_v6  ;;  %567 = vmatmul.msk.bf16.vlgmr.msra.gmra.mxu3 %vm101_vm0, %v575_v7 }
  0x21   :  { %562 = vmatmul.msk.bf16.gmra.mxu0 %vm101_vm0, %v570_v8  ;;  %564 = vmatmul.msk.bf16.gmra.mxu1 %vm101_vm0, %v572_v9 }
  0x22   :  { %566 = vmatmul.msk.bf16.gmra.mxu2 %vm101_vm0, %v574_v10  ;;  %568 = vmatmul.msk.bf16.gmra.mxu3 %vm101_vm0, %v576_v11 }
  0x8e   :  { %v763_v12 = vpop.f32.mrf.mxu0  ;;  %v765_v13 = vpop.f32.mrf.mxu1 }
  0x8f   :  { %v179_v14 = vmul.f32 %v765_v13, %v765_v13  ;;  %v175_v15 = vmul.f32 %v763_v12, %v763_v12 }
  0x91   :  { %199 = vadd.xlane.f32.xlu2 %v179_v14  ;;  %191 = vadd.xlane.f32.xlu0 %v175_v15 }
  0x95   :  { %v771_v16 = vpop.f32.mrf.mxu2  ;;  %v773_v17 = vpop.f32.mrf.mxu3 }
  0x96   :  { %v775_v18 = vpop.f32.mrf.mxu0  ;;  %v777_v19 = vpop.f32.mrf.mxu1  ;;  %v183_v26 = vmul.f32 %v771_v16, %v771_v16  ;;  %v187_v35 = vmul.f32 %v773_v17, %v773_v17 }
  0x97   :  { %v180_v20 = vmul.f32 %v777_v19, %v777_v19  ;;  %v176_v21 = vmul.f32 %v775_v18, %v775_v18 }
  0x99   :  { %201 = vadd.xlane.f32.xlu2 %v180_v20  ;;  %193 = vadd.xlane.f32.xlu0 %v176_v21 }
  0x9d   :  { %v783_v22 = vpop.f32.mrf.mxu2  ;;  %v785_v23 = vpop.f32.mrf.mxu3 }
  0x9e   :  { %v787_v24 = vpop.f32.mrf.mxu0  ;;  %v789_v25 = vpop.f32.mrf.mxu1  ;;  %v184_v31 = vmul.f32 %v783_v22, %v783_v22  ;;  %v188_v43 = vmul.f32 %v785_v23, %v785_v23 }
  0x9f   :  { %v181_v27 = vmul.f32 %v789_v25, %v789_v25  ;;  %v177_v28 = vmul.f32 %v787_v24, %v787_v24 }
  0xa1   :  { %207 = vadd.xlane.f32.xlu2 %v183_v26  ;;  %203 = vadd.xlane.f32.xlu0 %v181_v27 }
  0xa2   :  { %195 = vadd.xlane.f32.xlu1 %v177_v28 }
  0xa5   :  { %v797_v29 = vpop.f32.mrf.mxu2  ;;  %v803_v32 = vpop.f32.mrf.mxu3 }
  0xa6   :  { %v185_v30 = vmul.f32 %v797_v29, %v797_v29  ;;  %v805_v33 = vpop.f32.mrf.mxu0  ;;  %v817_v39 = vpop.f32.mrf.mxu1  ;;  %v189_v40 = vmul.f32 %v803_v32, %v803_v32 }
  0xa7   :  { %v178_v37 = vmul.f32 %v805_v33, %v805_v33  ;;  %v182_v42 = vmul.f32 %v817_v39, %v817_v39 }
  0xa9   :  { %209 = vadd.xlane.f32.xlu0 %v184_v31 }
  0xaa   :  { %211 = vadd.xlane.f32.xlu1 %v185_v30 }
  0xad   :  { %v807_v34 = vpop.f32.mrf.mxu2  ;;  %v815_v38 = vpop.f32.mrf.mxu3 }
  0xae   :  { %v186_v36 = vmul.f32 %v807_v34, %v807_v34  ;;  %v190_v41 = vmul.f32 %v815_v38, %v815_v38 }
  0xb0   :  { %213 = vadd.xlane.f32.xlu2 %v186_v36 }
  0xb1   :  { %215 = vadd.xlane.f32.xlu0 %v187_v35 }
  0xb2   :  { %197 = vadd.xlane.f32.xlu1 %v178_v37 }
  0xb8   :  { %219 = vadd.xlane.f32.xlu2 %v189_v40 }
  0xb9   :  { %221 = vadd.xlane.f32.xlu0 %v190_v41 }
  0xba   :  { %205 = vadd.xlane.f32.xlu1 %v182_v42 }
  0xc2   :  { %217 = vadd.xlane.f32.xlu1 %v188_v43 }
 0x104   :  { %v192_v44 = vpop.xlane.xlu0 %191  ;;  %v827_v59 = vpop.xlane.xlu2 %199 }
 0x105   :  { %643 = vrsqrt.f32 %v192_v44  ;;  %vm245_vm2 = vweird.f32 %v192_v44  ;;  %vm223_vm4 = vcmp.gt.f32.partialorder %v192_v44, 0.0  ;;  %vm285_vm14 = vweird.f32 %v827_v59 }
 0x10b   :  { %v644_v45 = vpop.eup %643 }
 0x10c   :  { %v194_v46 = vpop.xlane.xlu0 %193  ;;  %v240_v47 = vmul.f32 %v644_v45, %v192_v44  ;;  %vm246_vm1 = vweird.f32 %v644_v45  ;;  %v834_v10 = vpop.xlane.xlu2 %201 }
 0x10d   :  { %645 = vrsqrt.f32 %v194_v46  ;;  %vm247_vm3 = vmor %vm245_vm2, %vm246_vm1  ;;  %vm255_vm6 = vweird.f32 %v194_v46  ;;  %vm224_vm8 = vcmp.gt.f32.partialorder %v194_v46, 0.0 }
 0x10e   :  { %v241_v48 = vmul.f32 %v644_v45, %v240_v47 }
 0x110   :  { %v242_v49 = vmul.f32 0.5, %v241_v48 }
 0x112   :  { %v243_v51 = vsub.f32 1.5, %v242_v49 }
 0x113   :  { %v646_v50 = vpop.eup %645 }
 0x114   :  { %v250_v52 = vmul.f32 %v646_v50, %v194_v46  ;;  %v244_v55 = vmul.f32 %v644_v45, %v243_v51  ;;  %vm256_vm5 = vweird.f32 %v646_v50  ;;  %v850_v51 = vpop.xlane.xlu2 %207 }
 0x115   :  { %v196_v53 = vpop.xlane.xlu1 %195  ;;  %vm257_vm7 = vmor %vm255_vm6, %vm256_vm5  ;;  %vm295_vm5 = vweird.f32 %v834_v10 }
 0x116   :  { %v251_v54 = vmul.f32 %v646_v50, %v250_v52  ;;  %647 = vrsqrt.f32 %v196_v53  ;;  %v248_v57 = vsel %vm247_vm3, %v644_v45, %v244_v55  ;;  %vm265_vm10 = vweird.f32 %v196_v53 }
 0x117   :  { %v399_v58 = vsel %vm223_vm4, %v248_v57, 0.0  ;;  %649 = vrsqrt.f32 %v827_v59  ;;  %vm225_vm12 = vcmp.gt.f32.partialorder %v196_v53, 0.0  ;;  %vm227_vm4 = vcmp.gt.f32.partialorder %v827_v59, 0.0 }
 0x118   :  { %v252_v56 = vmul.f32 0.5, %v251_v54  ;;  %v415_v61 = vmul.f32 %v399_v58, %v763_v12 }
 0x11a   :  { %v253_v60 = vsub.f32 1.5, %v252_v56  ;;  %431 = vxpose.xlu1.b32.start [1/16] %v415_v61, 128 }
 0x11c   :  { %v648_v62 = vpop.eup %647  ;;  %v254_v2 = vmul.f32 %v646_v50, %v253_v60 }
 0x11d   :  { %v830_v63 = vpop.xlane.xlu1 %211  ;;  %v260_v0 = vmul.f32 %v648_v62, %v196_v53  ;;  %v650_v9 = vpop.eup %649  ;;  %vm266_vm9 = vweird.f32 %v648_v62 }
 0x11e   :  { %v258_v4 = vsel %vm257_vm7, %v646_v50, %v254_v2  ;;  %v280_v12 = vmul.f32 %v650_v9, %v827_v59  ;;  %vm267_vm11 = vmor %vm265_vm10, %vm266_vm9  ;;  %vm286_vm15 = vweird.f32 %v650_v9 }
 0x11f   :  { %v261_v1 = vmul.f32 %v648_v62, %v260_v0  ;;  %v400_v5 = vsel %vm224_vm8, %v258_v4, 0.0  ;;  %vm287_vm3 = vmor %vm285_vm14, %vm286_vm15  ;;  %vm228_vm8 = vcmp.gt.f32.partialorder %v834_v10, 0.0 }
 0x120   :  { %v416_v7 = vmul.f32 %v400_v5, %v775_v18  ;;  %v281_v21 = vmul.f32 %v650_v9, %v280_v12  ;;  %v838_v18 = vpop.xlane.xlu0 %203 }
 0x121   :  { %v262_v3 = vmul.f32 0.5, %v261_v1  ;;  %vm305_vm9 = vweird.f32 %v838_v18 }
 0x122   :  { %432 = vxpose.xlu1.b32.cont [2/16] %v416_v7, 128  ;;  %v282_v31 = vmul.f32 0.5, %v281_v21 }
 0x123   :  { %v263_v6 = vsub.f32 1.5, %v262_v3 }
 0x124   :  { %v283_v40 = vsub.f32 1.5, %v282_v31 }
 0x125   :  { %v198_v8 = vpop.xlane.xlu1 %197  ;;  %v264_v11 = vmul.f32 %v648_v62, %v263_v6 }
 0x126   :  { %651 = vrsqrt.f32 %v198_v8  ;;  %vm275_vm0 = vweird.f32 %v198_v8  ;;  %v284_v44 = vmul.f32 %v650_v9, %v283_v40  ;;  %vm226_vm2 = vcmp.gt.f32.partialorder %v198_v8, 0.0 }
 0x127   :  { %653 = vrsqrt.f32 %v834_v10  ;;  %v268_v14 = vsel %vm267_vm11, %v648_v62, %v264_v11 }
 0x128   :  { %v401_v15 = vsel %vm225_vm12, %v268_v14, 0.0  ;;  %655 = vrsqrt.f32 %v838_v18  ;;  %v288_v53 = vsel %vm287_vm3, %v650_v9, %v284_v44  ;;  %v857_v60 = vpop.xlane.xlu0 %209  ;;  %vm229_vm12 = vcmp.gt.f32.partialorder %v838_v18, 0.0 }
 0x129   :  { %v417_v27 = vmul.f32 %v401_v15, %v787_v24  ;;  %v403_v55 = vsel %vm227_vm4, %v288_v53, 0.0  ;;  %vm231_vm4 = vcmp.gt.f32.partialorder %v850_v51, 0.0 }
 0x12b   :  { %433 = vxpose.xlu1.b32.cont [3/16] %v417_v27, 128 }
 0x12c   :  { %v652_v20 = vpop.eup %651 }
 0x12d   :  { %v270_v26 = vmul.f32 %v652_v20, %v198_v8  ;;  %v654_v28 = vpop.eup %653  ;;  %vm276_vm13 = vweird.f32 %v652_v20  ;;  %v843_v42 = vpop.xlane.xlu1 %205 }
 0x12e   :  { %v290_v35 = vmul.f32 %v654_v28, %v834_v10  ;;  %v656_v43 = vpop.eup %655  ;;  %vm277_vm1 = vmor %vm275_vm0, %vm276_vm13  ;;  %657 = vrsqrt.f32 %v843_v42  ;;  %vm296_vm6 = vweird.f32 %v654_v28  ;;  %vm315_vm13 = vweird.f32 %v843_v42 }
 0x12f   :  { %v271_v30 = vmul.f32 %v652_v20, %v270_v26  ;;  %v300_v46 = vmul.f32 %v656_v43, %v838_v18  ;;  %659 = vrsqrt.f32 %v850_v51  ;;  %vm297_vm7 = vmor %vm295_vm5, %vm296_vm6  ;;  %vm306_vm10 = vweird.f32 %v656_v43 }
 0x130   :  { %v291_v41 = vmul.f32 %v654_v28, %v290_v35  ;;  %661 = vrsqrt.f32 %v857_v60  ;;  %vm307_vm11 = vmor %vm305_vm9, %vm306_vm10  ;;  %vm230_vm0 = vcmp.gt.f32.partialorder %v843_v42, 0.0  ;;  %vm335_vm6 = vweird.f32 %v857_v60 }
 0x131   :  { %v272_v36 = vmul.f32 0.5, %v271_v30  ;;  %v301_v52 = vmul.f32 %v656_v43, %v300_v46  ;;  %663 = vrsqrt.f32 %v830_v63  ;;  %vm345_vm10 = vweird.f32 %v830_v63 }
 0x132   :  { %v292_v45 = vmul.f32 0.5, %v291_v41 }
 0x133   :  { %v273_v37 = vsub.f32 1.5, %v272_v36  ;;  %v302_v56 = vmul.f32 0.5, %v301_v52  ;;  %v875_v36 = vpop.xlane.xlu0 %215 }
 0x134   :  { %v293_v50 = vsub.f32 1.5, %v292_v45  ;;  %v658_v54 = vpop.eup %657 }
 0x135   :  { %v274_v24 = vmul.f32 %v652_v20, %v273_v37  ;;  %v310_v57 = vmul.f32 %v658_v54, %v843_v42  ;;  %v303_v59 = vsub.f32 1.5, %v302_v56  ;;  %v660_v0 = vpop.eup %659  ;;  %vm316_vm14 = vweird.f32 %v658_v54  ;;  %v882_v46 = vpop.xlane.xlu1 %217 }
 0x136   :  { %v294_v58 = vmul.f32 %v654_v28, %v293_v50  ;;  %v320_v2 = vmul.f32 %v660_v0, %v850_v51  ;;  %v662_v8 = vpop.eup %661  ;;  %vm317_vm15 = vmor %vm315_vm13, %vm316_vm14 }
 0x137   :  { %v278_v47 = vsel %vm277_vm1, %v652_v20, %v274_v24  ;;  %v311_v61 = vmul.f32 %v658_v54, %v310_v57  ;;  %v304_v4 = vmul.f32 %v656_v43, %v303_v59  ;;  %v330_v11 = vmul.f32 %v662_v8, %v857_v60  ;;  %v868_v20 = vpop.xlane.xlu2 %213  ;;  %v664_v18 = vpop.eup %663 }
 0x138   :  { %v402_v48 = vsel %vm226_vm2, %v278_v47, 0.0  ;;  %v298_v62 = vsel %vm297_vm7, %v654_v28, %v294_v58  ;;  %v321_v5 = vmul.f32 %v660_v0, %v320_v2  ;;  %665 = vrsqrt.f32 %v868_v20 }
 0x139   :  { %v418_v49 = vmul.f32 %v402_v48, %v805_v33  ;;  %v419_v33 = vmul.f32 %v403_v55, %v765_v13  ;;  %v404_v1 = vsel %vm228_vm8, %v298_v62, 0.0  ;;  %v312_v3 = vmul.f32 0.5, %v311_v61 }
 0x13a   :  { %v420_v13 = vmul.f32 %v404_v1, %v777_v19  ;;  %v308_v7 = vsel %vm307_vm11, %v656_v43, %v304_v4  ;;  %v322_v10 = vmul.f32 0.5, %v321_v5  ;;  %v331_v15 = vmul.f32 %v662_v8, %v330_v11 }
 0x13b   :  { %434 = vxpose.xlu1.b32.cont [4/16] %v418_v49, 128  ;;  %v313_v6 = vsub.f32 1.5, %v312_v3  ;;  %v405_v9 = vsel %vm229_vm12, %v308_v7, 0.0  ;;  %vm326_vm1 = vweird.f32 %v660_v0  ;;  %v340_v28 = vmul.f32 %v664_v18, %v830_v63  ;;  %v222_v62 = vpop.xlane.xlu0 %221 }
 0x13c   :  { %v421_v19 = vmul.f32 %v405_v9, %v789_v25  ;;  %v323_v14 = vsub.f32 1.5, %v322_v10  ;;  %v332_v27 = vmul.f32 0.5, %v331_v15  ;;  %vm325_vm2 = vweird.f32 %v850_v51 }
 0x13d   :  { %v314_v12 = vmul.f32 %v658_v54, %v313_v6  ;;  %vm327_vm3 = vmor %vm325_vm2, %vm326_vm1  ;;  %v341_v35 = vmul.f32 %v664_v18, %v340_v28  ;;  %667 = vrsqrt.f32 %v875_v36  ;;  %vm336_vm5 = vweird.f32 %v662_v8 }
 0x13e   :  { %v324_v30 = vmul.f32 %v660_v0, %v323_v14  ;;  %v333_v31 = vsub.f32 1.5, %v332_v27  ;;  %v666_v40 = vpop.eup %665  ;;  %vm337_vm7 = vmor %vm335_vm6, %vm336_vm5  ;;  %vm232_vm8 = vcmp.gt.f32.partialorder %v857_v60, 0.0  ;;  %669 = vrsqrt.f32 %v882_v46 }
 0x13f   :  { %v318_v21 = vsel %vm317_vm15, %v658_v54, %v314_v12  ;;  %v342_v42 = vmul.f32 0.5, %v341_v35  ;;  %v350_v43 = vmul.f32 %v666_v40, %v868_v20  ;;  %vm346_vm9 = vweird.f32 %v664_v18  ;;  %v889_v55 = vpop.xlane.xlu2 %219 }
 0x140   :  { %v406_v26 = vsel %vm230_vm0, %v318_v21, 0.0  ;;  %v328_v37 = vsel %vm327_vm3, %v660_v0, %v324_v30  ;;  %v334_v24 = vmul.f32 %v662_v8, %v333_v31  ;;  %vm347_vm11 = vmor %vm345_vm10, %vm346_vm9  ;;  %vm233_vm12 = vcmp.gt.f32.partialorder %v830_v63, 0.0 }
 0x141   :  { %v422_v25 = vmul.f32 %v406_v26, %v817_v39  ;;  %v407_v41 = vsel %vm231_vm4, %v328_v37, 0.0  ;;  %v343_v44 = vsub.f32 1.5, %v342_v42  ;;  %v351_v45 = vmul.f32 %v666_v40, %v350_v43 }
 0x142   :  { %v423_v39 = vmul.f32 %v407_v41, %v771_v16  ;;  %v338_v47 = vsel %vm337_vm7, %v662_v8, %v334_v24  ;;  %671 = vrsqrt.f32 %v889_v55  ;;  %vm356_vm13 = vweird.f32 %v666_v40 }
 0x143   :  { %435 = vxpose.xlu1.b32.cont [5/16] %v419_v33, 128  ;;  %v668_v48 = vpop.eup %667  ;;  %v408_v49 = vsel %vm232_vm8, %v338_v47, 0.0  ;;  %v352_v50 = vmul.f32 0.5, %v351_v45  ;;  %v344_v52 = vmul.f32 %v664_v18, %v343_v44  ;;  %vm355_vm14 = vweird.f32 %v868_v20 }
 0x144   :  { %v360_v51 = vmul.f32 %v668_v48, %v875_v36  ;;  %v424_v16 = vmul.f32 %v408_v49, %v783_v22  ;;  %v670_v57 = vpop.eup %669  ;;  %vm357_vm15 = vmor %vm355_vm14, %vm356_vm13  ;;  %vm234_vm0 = vcmp.gt.f32.partialorder %v868_v20, 0.0  ;;  %vm365_vm1 = vweird.f32 %v875_v36 }
 0x145   :  { %v353_v53 = vsub.f32 1.5, %v352_v50  ;;  %v348_v56 = vsel %vm347_vm11, %v664_v18, %v344_v52  ;;  %v370_v59 = vmul.f32 %v670_v57, %v882_v46  ;;  %vm366_vm2 = vweird.f32 %v668_v48 }
 0x146   :  { %v361_v54 = vmul.f32 %v668_v48, %v360_v51  ;;  %v409_v58 = vsel %vm233_vm12, %v348_v56, 0.0  ;;  %673 = vrsqrt.f32 %v222_v62  ;;  %vm367_vm3 = vmor %vm365_vm1, %vm366_vm2  ;;  %vm235_vm4 = vcmp.gt.f32.partialorder %v875_v36, 0.0 }
 0x147   :  { %v354_v60 = vmul.f32 %v666_v40, %v353_v53  ;;  %v425_v22 = vmul.f32 %v409_v58, %v797_v29  ;;  %v371_v0 = vmul.f32 %v670_v57, %v370_v59  ;;  %vm375_vm5 = vweird.f32 %v882_v46 }
 0x148   :  { %v362_v33 = vmul.f32 0.5, %v361_v54  ;;  %v672_v2 = vpop.eup %671  ;;  %vm376_vm6 = vweird.f32 %v670_v57  ;;  %vm236_vm8 = vcmp.gt.f32.partialorder %v882_v46, 0.0  ;;  %vm385_vm9 = vweird.f32 %v889_v55 }
 0x149   :  { %v358_v1 = vsel %vm357_vm15, %v666_v40, %v354_v60  ;;  %v380_v3 = vmul.f32 %v672_v2, %v889_v55  ;;  %v372_v4 = vmul.f32 0.5, %v371_v0  ;;  %vm377_vm7 = vmor %vm375_vm5, %vm376_vm6  ;;  %vm386_vm10 = vweird.f32 %v672_v2 }
 0x14a   :  { %v363_v61 = vsub.f32 1.5, %v362_v33  ;;  %v410_v63 = vsel %vm234_vm0, %v358_v1, 0.0  ;;  %vm387_vm11 = vmor %vm385_vm9, %vm386_vm10  ;;  %vm237_vm12 = vcmp.gt.f32.partialorder %v889_v55, 0.0  ;;  %vm395_vm13 = vweird.f32 %v222_v62 }
 0x14b   :  { %436 = vxpose.xlu1.b32.cont [6/16] %v420_v13, 128  ;;  %v426_v29 = vmul.f32 %v410_v63, %v807_v34  ;;  %v381_v5 = vmul.f32 %v672_v2, %v380_v3  ;;  %v373_v6 = vsub.f32 1.5, %v372_v4  ;;  %vm238_vm0 = vcmp.gt.f32.partialorder %v222_v62, 0.0 }
 0x14c   :  { %v364_v13 = vmul.f32 %v668_v48, %v363_v61  ;;  %v674_v8 = vpop.eup %673 }
 0x14d   :  { %v382_v10 = vmul.f32 0.5, %v381_v5  ;;  %v390_v11 = vmul.f32 %v674_v8, %v222_v62  ;;  %v374_v12 = vmul.f32 %v670_v57, %v373_v6  ;;  %vm396_vm14 = vweird.f32 %v674_v8 }
 0x14e   :  { %v368_v7 = vsel %vm367_vm3, %v668_v48, %v364_v13  ;;  %vm397_vm15 = vmor %vm395_vm13, %vm396_vm14 }
 0x14f   :  { %v411_v9 = vsel %vm235_vm4, %v368_v7, 0.0  ;;  %v383_v14 = vsub.f32 1.5, %v382_v10  ;;  %v391_v15 = vmul.f32 %v674_v8, %v390_v11  ;;  %v378_v34 = vsel %vm377_vm7, %v670_v57, %v374_v12 }
 0x150   :  { %v412_v20 = vsel %vm236_vm8, %v378_v34, 0.0 }
 0x151   :  { %v384_v21 = vmul.f32 %v672_v2, %v383_v14  ;;  %v392_v18 = vmul.f32 0.5, %v391_v15  ;;  %v428_v26 = vmul.f32 %v412_v20, %v785_v23 }
 0x153   :  { %437 = vxpose.xlu1.b32.cont [7/16] %v421_v19, 128  ;;  %v427_v19 = vmul.f32 %v411_v9, %v773_v17  ;;  %v388_v27 = vsel %vm387_vm11, %v672_v2, %v384_v21  ;;  %v393_v28 = vsub.f32 1.5, %v392_v18 }
 0x154   :  { %v413_v17 = vsel %vm237_vm12, %v388_v27, 0.0 }
 0x155   :  { %v394_v30 = vmul.f32 %v674_v8, %v393_v28 }
 0x157   :  { %v398_v31 = vsel %vm397_vm15, %v674_v8, %v394_v30 }
 0x158   :  { %v414_v35 = vsel %vm238_vm0, %v398_v31, 0.0 }
 0x159   :  { %v430_v36 = vmul.f32 %v414_v35, %v815_v38 }
 0x15b   :  { %438 = vxpose.xlu1.b32.cont [8/16] %v422_v25, 128  ;;  %v429_v25 = vmul.f32 %v413_v17, %v803_v32 }
 0x163   :  { %439 = vxpose.xlu1.b32.cont [9/16] %v423_v39, 128 }
 0x16b   :  { %440 = vxpose.xlu1.b32.cont [10/16] %v424_v16, 128 }
 0x173   :  { %441 = vxpose.xlu1.b32.cont [11/16] %v425_v22, 128 }
 0x17b   :  { %442 = vxpose.xlu1.b32.cont [12/16] %v426_v29, 128 }
 0x183   :  { %443 = vxpose.xlu1.b32.cont [13/16] %v427_v19, 128 }
 0x18b   :  { %444 = vxpose.xlu1.b32.cont [14/16] %v428_v26, 128 }
 0x193   :  { %445 = vxpose.xlu1.b32.cont [15/16] %v429_v25, 128 }
 0x19b   :  { %446 = vxpose.xlu1.b32.end [16/16] %v430_v36, 128 }
 0x1c7   :  { %v447_v23 = vpop.trf.xlu1 }
 0x1cf   :  { %v448_v37 = vpop.trf.xlu1 }
 0x1d0   :  { %v584_v40 = vpack.c.bf16 %v448_v37, %v447_v23 }
 0x1d2   :  { %585 = vst [vmem:[#allocation2] sm:$0xff] %v584_v40  }
 0x1d7   :  { %v449_v41 = vpop.trf.xlu1 }
 0x1df   :  { %v450_v42 = vpop.trf.xlu1 }
 0x1e0   :  { %v589_v43 = vpack.c.bf16 %v450_v42, %v449_v41 }
 0x1e2   :  { %621 = vst [vmem:[#allocation2 + $0x8] sm:$0xff] %v589_v43  }
 0x1e7   :  { %v451_v24 = vpop.trf.xlu1 }
 0x1ef   :  { %v452_v39 = vpop.trf.xlu1 }
 0x1f0   :  { %v594_v44 = vpack.c.bf16 %v452_v39, %v451_v24 }
 0x1f2   :  { %622 = vst [vmem:[#allocation2 + $0x10] sm:$0xff] %v594_v44  }
 0x1f7   :  { %v453_v32 = vpop.trf.xlu1 }
 0x1ff   :  { %v454_v45 = vpop.trf.xlu1 }
 0x200   :  { %v599_v46 = vpack.c.bf16 %v454_v45, %v453_v32 }
 0x202   :  { %623 = vst [vmem:[#allocation2 + $0x18] sm:$0xff] %v599_v46  }
 0x207   :  { %v455_v47 = vpop.trf.xlu1 }
 0x20f   :  { %v456_v48 = vpop.trf.xlu1 }
 0x210   :  { %v604_v38 = vpack.c.bf16 %v456_v48, %v455_v47 }
 0x212   :  { %624 = vst [vmem:[#allocation2 + $0x20] sm:$0xff] %v604_v38  }
 0x217   :  { %v457_v49 = vpop.trf.xlu1 }
 0x21f   :  { %v458_v50 = vpop.trf.xlu1 }
 0x220   :  { %v609_v51 = vpack.c.bf16 %v458_v50, %v457_v49 }
 0x222   :  { %625 = vst [vmem:[#allocation2 + $0x28] sm:$0xff] %v609_v51  }
 0x227   :  { %v459_v52 = vpop.trf.xlu1 }
 0x22f   :  { %v460_v16 = vpop.trf.xlu1 }
 0x230   :  { %v614_v53 = vpack.c.bf16 %v460_v16, %v459_v52 }
 0x232   :  { %626 = vst [vmem:[#allocation2 + $0x30] sm:$0xff] %v614_v53  }
 0x237   :  { %v461_v54 = vpop.trf.xlu1 }
 0x23f   :  { %v462_v55 = vpop.trf.xlu1 }
 0x240   :  { %v619_v56 = vpack.c.bf16 %v462_v55, %v461_v54 }
 0x242   :  { %627 = vst [vmem:[#allocation2 + $0x38] sm:$0xff] %v619_v56  }
 0x243   :  { %507 = dma.vmem_to_hbm [thread:$0]  %s500_s4, 1024, %s502_s7, [#allocation3], %s702_s8, %s702_s8, %s703_s9  }
 0x244   :  { %699 = dma.done.wait [#allocation3], 1024  }
 0x245   :  { %700 = vsyncadd [#allocation3], 4294966272 }
 0x246   :  { %512 = vsyncpa [#allocation3], 1 }

</bundles_post_ra>
